<compile_context>
chip_gen: v6e
topology: v6e:2x2x1
jax: 0.10.0
libtpu: 0.0.40
codegen_flags: <defaults>
</compile_context>

<pallas_src>
import jax
import jax.numpy as jnp
from jax import lax
from jax.experimental import pallas as pl
from jax.experimental.pallas import tpu as pltpu

POWER = 2  # matches Normalize(power=2)


# --------------------------------------------------------------------------
# helpers
# --------------------------------------------------------------------------
def _sublane(dtype) -> int:
    # sublane granularity: 8 for 4-byte, 16 for 2-byte, 32 for 1-byte dtypes
    itemsize = jnp.dtype(dtype).itemsize
    return 8 * max(1, 4 // itemsize)


def _round_down(a, b):
    return (a // b) * b


def _budgets(max_block_bytes, vmem_limit_bytes):
    """Generation-aware VMEM / block budgets."""
    try:
        vmem_cap = int(pltpu.get_tpu_info().vmem_capacity_bytes)
    except Exception:  # off-TPU / older jax: assume the larger (v5e/v6e) VMEM
        vmem_cap = 128 << 20
    if vmem_limit_bytes is None:
        # 64 MiB on 128 MiB chips (v5e/v6e), 48 MiB on 64 MiB chips (v7x)
        vmem_limit_bytes = min(64 << 20, (vmem_cap * 3) // 4)
    if max_block_bytes is None:
        # double-buffered in+out blocks + in-kernel f32 temps ~ 6-8x one block
        max_block_bytes = max(1 << 20, vmem_limit_bytes // 8)
    return max_block_bytes, vmem_limit_bytes


def _pick_row_tile(n, sub, tile_cap):
    """Row tile: sublane multiple, <= n, and >=2 grid steps when n allows it
    (so both v7x TensorCores get work; a no-op on single-TC v5e/v6e)."""
    if n <= sub:
        return n
    max_tile = _round_down(n, sub)
    tile_n = max(sub, min(tile_cap, max_tile))
    if pl.cdiv(n, tile_n) < 2 and n >= 2 * sub:
        half = pl.cdiv(pl.cdiv(n, 2), sub) * sub
        tile_n = max(sub, min(tile_n, half, max_tile))
    return tile_n


def _scale_and_store(o_ref, x, xf, inv):
    if jnp.dtype(o_ref.dtype).itemsize >= 4:
        o_ref[...] = (xf * inv).astype(o_ref.dtype)
    else:
        # bf16 (and narrower) outputs: scale natively so the f32 copy of the
        # tile is not kept live through the store path (VMEM on v7x) and the
        # store-side VALU/vreg traffic is halved.
        o_ref[...] = x * inv.astype(x.dtype)


# --------------------------------------------------------------------------
# kernels
# --------------------------------------------------------------------------
def _lane_norm_kernel(x_ref, o_ref):
    # block (tile_n, D): reduce over the feature (lane) axis
    x = x_ref[...]
    xf = x.astype(jnp.float32)
    inv = lax.rsqrt(jnp.sum(xf * xf, axis=-1, keepdims=True))
    _scale_and_store(o_ref, x, xf, inv)


def _sublane_norm_kernel(x_ref, o_ref):
    # block (1, C, tile_hw): reduce over the channel (sublane) axis,
    # H*W stays on the 128-lane axis -> lane-dense stores.
    x = x_ref[...]
    xf = x.astype(jnp.float32)
    inv = lax.rsqrt(jnp.sum(xf * xf, axis=-2, keepdims=True))
    _scale_and_store(o_ref, x, xf, inv)


def _make_ssq_kernel(d, tile_d):
    ragged = (d % tile_d) != 0

    def ssq_kernel(x_ref, ssq_ref):
        k = pl.program_id(1)

        @pl.when(k == 0)
        def _():
            ssq_ref[...] = jnp.zeros_like(ssq_ref)

        xf = x_ref[...].astype(jnp.float32)
        if ragged:
            # mask out-of-range lanes of the ragged final feature block so
            # garbage does not enter the reduction
            valid = d - k * tile_d
            lane = lax.broadcasted_iota(jnp.int32, xf.shape, 1)
            xf = jnp.where(lane < valid, xf, 0.0)
        ssq_ref[...] += jnp.sum(xf * xf, axis=-1, keepdims=True)

    return ssq_kernel


def _scale_kernel(x_ref, ssq_ref, o_ref):
    x = x_ref[...]
    inv = lax.rsqrt(ssq_ref[...])
    _scale_and_store(o_ref, x, x.astype(jnp.float32), inv)


# --------------------------------------------------------------------------
# wrappers
# --------------------------------------------------------------------------
def _normalize_2d(x, *, max_block_bytes, vmem_limit_bytes):
    n, d = x.shape
    itemsize = jnp.dtype(x.dtype).itemsize
    sub = _sublane(x.dtype)
    row_bytes = max(1, d * itemsize)

    if sub * row_bytes > max_block_bytes:
        # even the minimum (sublane x D) block blows the budget: tile features
        return _normalize_2d_wide(x, max_block_bytes=max_block_bytes,
                                  vmem_limit_bytes=vmem_limit_bytes)

    tile_cap = max(sub, _round_down(max_block_bytes // row_bytes, sub))
    tile_n = _pick_row_tile(n, sub, tile_cap)

    return pl.pallas_call(
        _lane_norm_kernel,
        out_shape=jax.ShapeDtypeStruct((n, d), x.dtype),
        grid=(pl.cdiv(n, tile_n),),
        in_specs=[pl.BlockSpec((tile_n, d), lambda i: (i, 0))],
        out_specs=pl.BlockSpec((tile_n, d), lambda i: (i, 0)),
        compiler_params=pltpu.CompilerParams(
            dimension_semantics=("parallel",),
            vmem_limit_bytes=vmem_limit_bytes),
        cost_estimate=pl.CostEstimate(
            flops=3 * n * d, transcendentals=n,
            bytes_accessed=2 * n * d * itemsize),
    )(x)


def _normalize_2d_wide(x, *, max_block_bytes, vmem_limit_bytes):
    """Two-pass path for very wide feature dims: (1) per-row sum of squares
    accumulated over feature tiles, (2) scale by rsqrt of the row norm."""
    n, d = x.shape
    itemsize = jnp.dtype(x.dtype).itemsize
    sub = _sublane(x.dtype)

    tile_d = max(128, _round_down(max_block_bytes // (sub * itemsize), 128))
    tile_d = min(tile_d, d)
    tile_n_cap = max(sub, _round_down(max_block_bytes // (tile_d * itemsize), sub))
    tile_n = _pick_row_tile(n, sub, tile_n_cap)
    grid = (pl.cdiv(n, tile_n), pl.cdiv(d, tile_d))

    ssq = pl.pallas_call(
        _make_ssq_kernel(d, tile_d),
        out_shape=jax.ShapeDtypeStruct((n, 1), jnp.float32),
        grid=grid,
        in_specs=[pl.BlockSpec((tile_n, tile_d), lambda i, k: (i, k))],
        out_specs=pl.BlockSpec((tile_n, 1), lambda i, k: (i, 0)),
        compiler_params=pltpu.CompilerParams(
            dimension_semantics=("parallel", "arbitrary"),
            vmem_limit_bytes=vmem_limit_bytes),
        cost_estimate=pl.CostEstimate(
            flops=2 * n * d, transcendentals=0,
            bytes_accessed=n * d * itemsize + n * 4),
    )(x)

    return pl.pallas_call(
        _scale_kernel,
        out_shape=jax.ShapeDtypeStruct((n, d), x.dtype),
        grid=grid,
        in_specs=[pl.BlockSpec((tile_n, tile_d), lambda i, k: (i, k)),
                  pl.BlockSpec((tile_n, 1), lambda i, k: (i, 0))],
        out_specs=pl.BlockSpec((tile_n, tile_d), lambda i, k: (i, k)),
        compiler_params=pltpu.CompilerParams(
            dimension_semantics=("parallel", "parallel"),
            vmem_limit_bytes=vmem_limit_bytes),
        cost_estimate=pl.CostEstimate(
            flops=n * d, transcendentals=n,
            bytes_accessed=2 * n * d * itemsize + n * 4),
    )(x, ssq)


def _normalize_nd(x, *, max_block_bytes, vmem_limit_bytes):
    """dim=1 reduction on (N, C, *spatial) without any HBM transpose."""
    shape = x.shape
    n, c = shape[0], shape[1]
    hw = 1
    for s in shape[2:]:
        hw *= s
    x3 = x.reshape(n, c, hw)  # merging trailing dims is a free view
    itemsize = jnp.dtype(x.dtype).itemsize
    col_bytes = max(1, c * itemsize)

    if hw <= 128:
        tile_hw = hw
    else:
        tile_cap = max(128, _round_down(max_block_bytes // col_bytes, 128))
        tile_hw = max(128, min(tile_cap, _round_down(hw, 128)))
        if n * pl.cdiv(hw, tile_hw) < 2:   # keep both v7x TensorCores busy
            tile_hw = max(128, _round_down(pl.cdiv(hw, 2), 128))

    grid = (n, pl.cdiv(hw, tile_hw))
    out = pl.pallas_call(
        _sublane_norm_kernel,
        out_shape=jax.ShapeDtypeStruct((n, c, hw), x.dtype),
        grid=grid,
        in_specs=[pl.BlockSpec((1, c, tile_hw), lambda i, j: (i, 0, j))],
        out_specs=pl.BlockSpec((1, c, tile_hw), lambda i, j: (i, 0, j)),
        compiler_params=pltpu.CompilerParams(
            dimension_semantics=("parallel", "parallel"),
            vmem_limit_bytes=vmem_limit_bytes),
        cost_estimate=pl.CostEstimate(
            flops=3 * n * c * hw, transcendentals=n * hw,
            bytes_accessed=2 * n * c * hw * itemsize),
    )(x3)
    return out.reshape(shape)


def _normalize_via_transpose(x, *, max_block_bytes, vmem_limit_bytes):
    # TODO(synk): giant-channel feature maps fall back to moving dim=1 onto the
    # lane axis (two extra HBM passes); a fused transposing kernel would avoid it.
    perm = (0,) + tuple(range(2, x.ndim)) + (1,)
    inv_perm = [0] * x.ndim
    for i, p in enumerate(perm):
        inv_perm[p] = i
    xt = jnp.transpose(x, perm)
    lead = xt.shape[:-1]
    out2d = _normalize_2d(xt.reshape(-1, xt.shape[-1]),
                          max_block_bytes=max_block_bytes,
                          vmem_limit_bytes=vmem_limit_bytes)
    return jnp.transpose(out2d.reshape(lead + (xt.shape[-1],)), inv_perm)


def normalize(x, *, max_block_bytes=None, vmem_limit_bytes=None):
    """PyTorch `Normalize(power=2)`: x / x.pow(2).sum(dim=1, keepdim=True).sqrt()."""
    if x.ndim < 2:
        raise ValueError("Normalize reduces over dim=1; need ndim >= 2")
    max_block_bytes, vmem_limit_bytes = _budgets(max_block_bytes, vmem_limit_bytes)
    if x.ndim == 2:
        return _normalize_2d(x, max_block_bytes=max_block_bytes,
                             vmem_limit_bytes=vmem_limit_bytes)
    c = x.shape[1]
    itemsize = jnp.dtype(x.dtype).itemsize
    if c * 128 * itemsize > max_block_bytes:
        return _normalize_via_transpose(x, max_block_bytes=max_block_bytes,
                                        vmem_limit_bytes=vmem_limit_bytes)
    return _normalize_nd(x, max_block_bytes=max_block_bytes,
                         vmem_limit_bytes=vmem_limit_bytes)


# --------------------------------------------------------------------------
# reference + tests
# --------------------------------------------------------------------------
def _ref_normalize(x):
    xf = x.astype(jnp.float32)
    nrm = jnp.power(jnp.sum(jnp.power(xf, POWER), axis=1, keepdims=True),
                    1.0 / POWER)
    return (xf / nrm).astype(x.dtype)


if __name__ == "__main__":
    key = jax.random.PRNGKey(0)
    ks = jax.random.split(key, 8)

    def check(o, x, atol=1e-5, rtol=1e-5):
        assert o.shape == x.shape and o.dtype == x.dtype
        ref = _ref_normalize(x)
        assert jnp.allclose(o.astype(jnp.float32), ref.astype(jnp.float32),
                            atol=atol, rtol=rtol), "mismatch vs reference"

    # 1) typical contrastive-embedding batch (lane-aligned)
    x1 = jax.random.normal(ks[0], (8, 128), dtype=jnp.float32)
    check(jax.block_until_ready(normalize(x1)), x1)

    # 2) unaligned batch / feature sizes (full-dim block, no pad/slice pass)
    x2 = jax.random.normal(ks[1], (6, 96), dtype=jnp.float32)
    check(jax.block_until_ready(normalize(x2)), x2)

    # 3) ragged row grid (last row block masked, not padded)
    x3 = jax.random.normal(ks[2], (10, 128), dtype=jnp.float32)
    check(jax.block_until_ready(normalize(x3)), x3)

    # 4) 4-D feature map: dim=1 reduction without any HBM transpose
    x4 = jax.random.normal(ks[3], (2, 4, 16, 16), dtype=jnp.float32)
    check(jax.block_until_ready(normalize(x4)), x4)

    # 5) 3-D input with a non-128-multiple spatial size (ragged lane block)
    x5 = jax.random.normal(ks[4], (1, 4, 200), dtype=jnp.float32)
    check(jax.block_until_ready(normalize(x5)), x5)

    # 6) tiny spatial extent (lane dim < 128, full-dim block)
    x6 = jax.random.normal(ks[5], (2, 3, 5, 7), dtype=jnp.float32)
    check(jax.block_until_ready(normalize(x6)), x6)

    # 7) bf16 I/O, f32 accumulation, native-dtype scaling on the store side
    x7 = jax.random.normal(ks[6], (32, 256), dtype=jnp.bfloat16)
    check(jax.block_until_ready(normalize(x7)), x7, atol=2e-2, rtol=2e-2)

    # 8) force the wide-feature two-pass path with a tiny block budget
    x8 = jax.random.normal(ks[7], (64, 320), dtype=jnp.float32)
    o8 = jax.block_until_ready(normalize(x8, max_block_bytes=4096))
    check(o8, x8)

    print("KERNEL_OK")
</pallas_src>

<mosaic_0001>
module attributes {stable_mosaic.version = 11 : i64} {
  func.func @_lane_norm_kernel(%arg0: i32, %arg1: memref<8x128xf32, #tpu.memory_space<vmem>>, %arg2: memref<8x128xf32, #tpu.memory_space<vmem>>) attributes {dimension_semantics = [#tpu.dimension_semantics<parallel>], iteration_bounds = array<i64: 1>, scalar_prefetch = 0 : i64, scratch_operands = 0 : i64, tpu.core_type = #tpu.core_type<tc>, window_params = [{transform_indices = @transform_0, window_bounds = array<i64: 8, 128>}, {transform_indices = @transform_1, window_bounds = array<i64: 8, 128>}]} {
    %c0 = arith.constant 0 : index
    %c0_0 = arith.constant 0 : index
    %0 = vector.load %arg1[%c0, %c0_0] : memref<8x128xf32, #tpu.memory_space<vmem>>, vector<8x128xf32>
    %1 = arith.mulf %0, %0 : vector<8x128xf32>
    %cst = arith.constant dense<0.000000e+00> : vector<8xf32>
    %2 = vector.multi_reduction <add>, %1, %cst [1] : vector<8x128xf32> to vector<8xf32>
    %3 = vector.shape_cast %2 : vector<8xf32> to vector<8x1xf32>
    %4 = math.rsqrt %3 : vector<8x1xf32>
    %5 = vector.broadcast %4 : vector<8x1xf32> to vector<8x128xf32>
    %6 = arith.mulf %0, %5 : vector<8x128xf32>
    %c0_1 = arith.constant 0 : index
    %c0_2 = arith.constant 0 : index
    %7 = vector.load %arg2[%c0_1, %c0_2] : memref<8x128xf32, #tpu.memory_space<vmem>>, vector<8x128xf32>
    tpu.vector_store %arg2[%c0_1, %c0_2], %6 {strides = array<i32>} : memref<8x128xf32, #tpu.memory_space<vmem>>, vector<8x128xf32>,
    return
  }
  func.func @transform_0(%arg0: i32) -> (i32, i32) {
    %c0_i32 = arith.constant 0 : i32
    %c0_i32_0 = arith.constant 0 : i32
    return %arg0, %c0_i32 : i32, i32
  }
  func.func @transform_1(%arg0: i32) -> (i32, i32) {
    %c0_i32 = arith.constant 0 : i32
    %c0_i32_0 = arith.constant 0 : i32
    return %arg0, %c0_i32 : i32, i32
  }
}

</mosaic_0001>

<bundles_post_ra>
// kernel: tpu_custom_call.1
= control target key start
LH: loop header
LB: loop body
LE: loop exit
PB: predicated region body
PF: predicated region fallthrough
CT: control target
= control target key end

     0   :  { %6 = vsyncpa [#allocation3], 0  ;;  %s109_s0 = inlined_call_operand.hbm [shape: f32[8,128], index: 0, kind: input, shape index: {}]   ;;  %s110_s1 = inlined_call_operand.hbm [shape: f32[8,128], index: 1, kind: output, shape index: {}]  }
   0x1   :  { %7 = vsyncpa [#allocation4], 0  ;;  %s91_s6 = smov [#allocation2]  }
   0x2   :  { %s14_s7 = sshll.u32 %s91_s6, 4  ;;  %s15_s7 = int_to_ptr.vmem [resolvable:$true] %s14_s7 }
   0x3   :  { %s55_s8 = scalar_lea.vmem %s15_s7, 128  ;;  %p60_p1 = scmp.lt.s32.totalorder %s15_s7, %s15_s7 }
   0x4   :  { %p56_p0 = scmp.ne.s32.totalorder %s15_s7, %s55_s8  ;;  %p61_p2 = scmp.lt.s32.totalorder %s55_s8, %s55_s8 }
   0x6   :  { %p62_p3 = por %p61_p2, %p60_p1 }
   0x8   :  { %p63_p4 = pnand %p62_p3, %p56_p0 }
   0xa   :  { %66 = shalt.err (!%p63_p4)
}
   0xb   :  { %17 = dma.hbm_to_vmem [thread:$0]  %s109_s0, 128, %s15_s7, [#allocation3]  }
   0xc   :  { %87 = dma.done.wait [#allocation3], 128  }
   0xd   :  { %88 = vsyncadd [#allocation3], 4294967168  ;;  %v21_v0 = vld [vmem:[#allocation2] sm:$0xff]  ;;  %s92_s11 = smov [#allocation5]  }
   0xe   :  { %v22_v1 = vmul.f32 %v21_v0, %v21_v0  ;;  %s34_s12 = sshll.u32 %s92_s11, 4  ;;  %s35_s12 = int_to_ptr.vmem [resolvable:$true] %s34_s12 }
   0xf   :  { %s67_s13 = scalar_lea.vmem %s35_s12, 128  ;;  %p72_p6 = scmp.lt.s32.totalorder %s35_s12, %s35_s12 }
  0x10   :  { %23 = vadd.xlane.f32.xlu0 %v22_v1  ;;  %p68_p5 = scmp.ne.s32.totalorder %s35_s12, %s67_s13  ;;  %p73_p7 = scmp.lt.s32.totalorder %s67_s13, %s67_s13 }
  0x12   :  { %p74_p8 = por %p73_p7, %p72_p6 }
  0x14   :  { %p75_p9 = pnand %p74_p8, %p68_p5 }
  0x99   :  { %v24_v2 = vpop.xlane.xlu0 %23 }
  0x9a   :  { %45 = vrsqrt.f32 %v24_v2 }
  0xa7   :  { %v46_v3 = vpop.eup %45 }
  0xa8   :  { %v26_v4 = vmul.f32 %v46_v3, %v21_v0 }
  0xaa   :  { %27 = vst [vmem:[#allocation5] sm:$0xff] %v26_v4 }
  0xab   :  { %78 = shalt.err (!%p75_p9)
}
  0xac   :  { %37 = dma.vmem_to_hbm [thread:$0]  %s35_s12, 128, %s110_s1, [#allocation4]  }
  0xad   :  { %89 = dma.done.wait [#allocation4], 128  }
  0xae   :  { %90 = vsyncadd [#allocation4], 4294967168 }
  0xaf   :  { %41 = vsyncpa [#allocation3], 1 }
  0xb0   :  { %42 = vsyncpa [#allocation4], 1 }

</bundles_post_ra>
